<compile_context>
chip_gen: v6e
topology: v6e:2x2x1
jax: 0.10.0
libtpu: 0.0.40
codegen_flags: <defaults>
</compile_context>

<pallas_src>
import functools
import math

import jax
import jax.numpy as jnp
from jax.experimental import pallas as pl
from jax.experimental.pallas import tpu as pltpu


# Per-output-buffer VMEM byte budget for one tile (x2 once double-buffered by
# the Pallas pipeline).  ~4 MiB keeps generation near the HBM roofline while
# staying well under v5e's 16 MiB scoped-VMEM default and v7x's 64 MiB VMEM.
_TARGET_BLOCK_BYTES = 4 << 20


def _ceil_div(a, b):
    return -(-a // b)


@functools.lru_cache(maxsize=1)
def _seq_axis_semantics():
    """Grid-axis semantics for the sequence-tile axis.

    Only CORE_PARALLEL actually shards a grid axis across v7x's two
    TensorCores ("parallel" vs "arbitrary" is a measured no-op in codegen).
    Probe once with a trivial kernel (compile + value check) and fall back to
    "arbitrary" if the enum is missing, fails to lower, or gives wrong data.
    """
    core_parallel = getattr(pltpu, "CORE_PARALLEL", None)
    if core_parallel is None:
        return "arbitrary"

    def probe_kernel(o_ref):
        o_ref[...] = jnp.zeros_like(o_ref) + pl.program_id(0).astype(jnp.float32)

    try:
        out = pl.pallas_call(
            probe_kernel,
            out_shape=jax.ShapeDtypeStruct((16, 128), jnp.float32),
            grid=(2,),
            out_specs=pl.BlockSpec((8, 128), lambda i: (i, 0)),
            compiler_params=pltpu.CompilerParams(
                dimension_semantics=(core_parallel,)),
        )()
        expected = jnp.repeat(jnp.arange(2, dtype=jnp.float32), 8)[:, None]
        if bool(jnp.all(out == expected)):
            return core_parallel
    except Exception:  # any lowering/runtime failure => safe fallback
        pass
    return "arbitrary"


def _pe_table_kernel(aux_ref, o_ref, *, fold, block_rows):
    """One (block_rows, fold*model_dim) tile of the lane-folded sinusoidal slab.

    Lane l encodes (q, j) = (l // model_dim, l % model_dim); slab row r covers
    positions p = r*fold + q, so
        o[r, l] = sin(p * freq[j])   for even j
                = cos(p * freq[j])   for odd  j
    aux_ref carries two precomputed per-lane rows (the only exp's, hoisted to
    plain JAX):
        aux[0, l] = freq[j] = exp((j & ~1) * (-ln 10000 / model_dim))
        aux[1, l] = q       = l // model_dim   (folded-position offset)
    Direct cos on odd lanes (no sin(x + pi/2) phase trick) keeps f32 fidelity
    vs the PyTorch table at large position*freq arguments.
    """
    R, L = o_ref.shape
    aux = aux_ref[...]                         # (2, L)
    freq = aux[0:1, :]                         # (1, L)
    offset = aux[1:2, :]                       # (1, L)

    base = pl.program_id(0) * block_rows
    row = (jax.lax.broadcasted_iota(jnp.int32, (R, 1), 0) + base).astype(jnp.float32)
    pos = row * float(fold) + offset           # (R, L); exact integers in f32
    ang = pos * freq                           # (R, L)

    lane = jax.lax.broadcasted_iota(jnp.int32, (1, L), 1)
    is_odd = (lane & 1) == 1                   # model_dim even => lane parity == j parity
    # NOTE: generation is cached (one-time cost).  If throughput ever matters on
    # v7x, sin/cos could be computed on half the lanes each and interleaved with
    # pltpu.roll to halve transcendental work.
    o_ref[...] = jnp.where(is_odd, jnp.cos(ang), jnp.sin(ang)).astype(o_ref.dtype)


def _build_pe_table(seq_len, model_dim, dtype=jnp.float32, *,
                    target_block_bytes=_TARGET_BLOCK_BYTES):
    """Sinusoidal table of shape (1, seq_len, model_dim) via a Pallas kernel."""
    assert model_dim % 2 == 0, "model_dim must be even (as in the PyTorch module)"
    dtype = jnp.dtype(dtype)

    # Lane folding: for model_dim < 128, fold `fold` consecutive positions into
    # the lane axis so stores are lane-dense (the biggest single layout lever).
    fold = max(1, 128 // model_dim) if model_dim < 128 else 1
    lanes = fold * model_dim
    rows = _ceil_div(seq_len, fold)            # one slab row covers `fold` positions

    # Per-lane constants, computed once in plain JAX (the only exp's).
    col = jnp.arange(lanes, dtype=jnp.int32)
    j = col % model_dim
    freq = jnp.exp((j & ~1).astype(jnp.float32) * (-math.log(10000.0) / model_dim))
    offset = (col // model_dim).astype(jnp.float32)
    aux = jnp.stack([freq, offset], axis=0)    # (2, lanes)

    # VMEM-budget-based sequence tiling: biggest tile under the budget (rounded
    # down to a multiple of 8 rows), or the full extent when it already fits.
    budget_rows = max(target_block_bytes // (dtype.itemsize * lanes), 8)
    block_rows = rows if rows <= budget_rows else max((budget_rows // 8) * 8, 8)
    grid = (_ceil_div(rows, block_rows),)

    slab = pl.pallas_call(
        functools.partial(_pe_table_kernel, fold=fold, block_rows=block_rows),
        out_shape=jax.ShapeDtypeStruct((rows, lanes), dtype),
        grid=grid,
        in_specs=[pl.BlockSpec((2, lanes), lambda i: (0, 0))],
        out_specs=pl.BlockSpec((block_rows, lanes), lambda i: (i, 0)),
        compiler_params=pltpu.CompilerParams(
            dimension_semantics=(_seq_axis_semantics(),)),
    )(aux)

    # Un-fold the slab: (rows, fold*D) -> (rows*fold, D) -> first seq_len rows.
    # One-time layout plumbing outside the kernel (the table is cached).
    pe = slab.reshape(rows * fold, model_dim)[:seq_len]
    return pe[None, :, :]


@functools.lru_cache(maxsize=None)
def _pe_table_cached(seq_len, model_dim, dtype_name):
    # Mirrors PyTorch's register_buffer: the table is input-independent, so it
    # is built once per (seq_len, model_dim, dtype).  The cached array is pinned
    # to the device(s) live at first call; under tracing we bypass this cache
    # (see positional_embeddings) so it is never captured as a jaxpr constant.
    return _build_pe_table(seq_len, model_dim, jnp.dtype(dtype_name))


def positional_embeddings(x, model_dim, dtype=jnp.float32):
    """JAX/Pallas equivalent of PositionalEmbeddings(model_dim).forward(x).

    Returns the (1, x.shape[1], model_dim) sinusoidal table (independent of x's
    values).  `dtype` is an opt-in bf16 knob for bandwidth-bound consumers;
    default float32 matches the PyTorch buffer.
    """
    assert model_dim % 2 == 0, "model_dim must be even (as in the PyTorch module)"
    seq_len = int(x.shape[1])
    tracer_cls = getattr(jax.core, "Tracer", ())
    if isinstance(x, tracer_cls):
        # Inside jit/vmap tracing: build inline (fully traceable) instead of
        # baking a cached concrete device array into the jaxpr as a constant.
        return _build_pe_table(seq_len, model_dim, jnp.dtype(dtype))
    return _pe_table_cached(seq_len, model_dim, jnp.dtype(dtype).name)


# ----------------------------------------------------------------------------
# Fused x + pe (the recurring-cost win: no cached-table HBM read per forward).
# ----------------------------------------------------------------------------
def _pe_add_kernel(freq_ref, x_ref, o_ref, *, block_s):
    """out = x + pe for one (1, block_s, model_dim) tile of x (pe built on the fly)."""
    _, S, D = x_ref.shape
    base = pl.program_id(1) * block_s
    pos = (jax.lax.broadcasted_iota(jnp.int32, (S, 1), 0) + base).astype(jnp.float32)
    ang = pos * freq_ref[...]                                    # (S, D)
    lane = jax.lax.broadcasted_iota(jnp.int32, (1, D), 1)
    pe = jnp.where((lane & 1) == 1, jnp.cos(ang), jnp.sin(ang))  # (S, D) f32
    o_ref[...] = (x_ref[...].astype(jnp.float32) + pe[None]).astype(o_ref.dtype)


def add_positional_embeddings(x):
    """Fused `x + PositionalEmbeddings(D)(x)` for x of shape (B, S, D)."""
    B, S, D = (int(d) for d in x.shape)
    assert D % 2 == 0
    col = jnp.arange(D, dtype=jnp.int32)
    freq = jnp.exp((col & ~1).astype(jnp.float32) * (-math.log(10000.0) / D))[None, :]

    itemsize = jnp.dtype(x.dtype).itemsize
    budget_rows = max((_TARGET_BLOCK_BYTES // 2) // (itemsize * D), 8)
    block_s = S if S <= budget_rows else max((budget_rows // 8) * 8, 8)
    grid = (B, _ceil_div(S, block_s))

    return pl.pallas_call(
        functools.partial(_pe_add_kernel, block_s=block_s),
        out_shape=jax.ShapeDtypeStruct(x.shape, x.dtype),
        grid=grid,
        in_specs=[
            pl.BlockSpec((1, D), lambda b, s: (0, 0)),
            pl.BlockSpec((1, block_s, D), lambda b, s: (b, s, 0)),
        ],
        out_specs=pl.BlockSpec((1, block_s, D), lambda b, s: (b, s, 0)),
        compiler_params=pltpu.CompilerParams(
            dimension_semantics=("parallel", "arbitrary")),
    )(freq, x)


# ----------------------------------------------------------------------------
# Reference + tests
# ----------------------------------------------------------------------------
def _reference_pe(seq_len, model_dim):
    """Plain-JAX reference mirroring the PyTorch __init__ table construction."""
    position = jnp.arange(seq_len, dtype=jnp.float32)[:, None]
    div_term = jnp.exp(jnp.arange(0, model_dim, 2, dtype=jnp.float32)
                       * (-math.log(10000.0) / model_dim))
    pe = jnp.zeros((seq_len, model_dim), jnp.float32)
    pe = pe.at[:, 0::2].set(jnp.sin(position * div_term))
    pe = pe.at[:, 1::2].set(jnp.cos(position * div_term))
    return pe[None]


if __name__ == "__main__":
    key = jax.random.PRNGKey(0)
    batch, seq, model_dim = 2, 8, 32
    x = jax.random.normal(key, (batch, seq, model_dim), dtype=jnp.float32)

    # Forward: returns pe[:, :seq, :] (lane-folded kernel since model_dim < 128).
    out = jax.block_until_ready(positional_embeddings(x, model_dim))
    ref = _reference_pe(seq, model_dim)
    assert out.shape == (1, seq, model_dim), out.shape
    assert jnp.allclose(out, ref, atol=1e-5), "mismatch vs reference (small)"

    # Same shape, different values -> cache hit (register_buffer behaviour).
    out2 = positional_embeddings(x + 1.0, model_dim)
    assert out2 is out

    # Under jit the builder is traced inline (no cached constant baked in).
    jit_out = jax.block_until_ready(
        jax.jit(lambda y: positional_embeddings(y, model_dim))(x))
    assert jnp.allclose(jit_out, ref, atol=1e-5), "mismatch vs reference (jit)"

    # Wide model_dim (no lane folding), single full-extent block.
    out_wide = jax.block_until_ready(
        positional_embeddings(jnp.zeros((1, 64, 256), jnp.float32), 256))
    assert jnp.allclose(out_wide, _reference_pe(64, 256), atol=1e-5), "wide"

    # Longer sequence, seq not divisible by the lane fold (exercises un-fold slice).
    seq_long = 1037
    out_long = jax.block_until_ready(
        positional_embeddings(jnp.zeros((1, seq_long, model_dim), jnp.float32),
                              model_dim))
    ref_long = _reference_pe(seq_long, model_dim)
    assert out_long.shape == (1, seq_long, model_dim)
    # Tolerance only bounds sin/cos range-reduction implementation differences at
    # |angle| ~ 1e3 (the phase-shift approximation error is gone).
    assert jnp.allclose(out_long, ref_long, atol=1e-3), "mismatch (long)"

    # Multi-block tiled path: tiny per-block budget to force several grid steps
    # (including a partial last block).
    tiled = jax.block_until_ready(
        _build_pe_table(seq_long, model_dim, target_block_bytes=64 << 10))
    assert jnp.allclose(tiled, ref_long, atol=1e-3), "mismatch (tiled)"

    # Opt-in bf16 output (halves store/read bandwidth for bandwidth-bound consumers).
    out_bf16 = jax.block_until_ready(
        positional_embeddings(x, model_dim, dtype=jnp.bfloat16))
    assert out_bf16.dtype == jnp.bfloat16
    assert jnp.allclose(out_bf16.astype(jnp.float32), ref, atol=1e-2), "bf16"

    # Fused x + pe path (removes the recurring cached-table HBM read).
    fused = jax.block_until_ready(add_positional_embeddings(x))
    assert fused.shape == x.shape
    assert jnp.allclose(fused, x + ref, atol=1e-5), "mismatch (fused add)"

    print("KERNEL_OK")
</pallas_src>

<mosaic_0001>
module attributes {stable_mosaic.version = 11 : i64} {
  func.func @_pe_table_kernel(%arg0: i32, %arg1: memref<2x128xf32, #tpu.memory_space<vmem>>, %arg2: memref<2x128xf32, #tpu.memory_space<vmem>>) attributes {dimension_semantics = [#tpu.dimension_semantics<arbitrary>], iteration_bounds = array<i64: 1>, scalar_prefetch = 0 : i64, scratch_operands = 0 : i64, tpu.core_type = #tpu.core_type<tc>, window_params = [{pipeline_mode = #tpu.pipeline_mode<synchronous>, transform_indices = @transform_0, window_bounds = array<i64: 2, 128>}, {transform_indices = @transform_1, window_bounds = array<i64: 2, 128>}]} {
    %c0 = arith.constant 0 : index
    %c0_0 = arith.constant 0 : index
    %0 = vector.load %arg1[%c0, %c0_0] : memref<2x128xf32, #tpu.memory_space<vmem>>, vector<2x128xf32>
    %1 = vector.extract_strided_slice %0 {offsets = [0, 0], sizes = [1, 128], strides = [1, 1]} : vector<2x128xf32> to vector<1x128xf32>
    %2 = vector.extract_strided_slice %0 {offsets = [1, 0], sizes = [1, 128], strides = [1, 1]} : vector<2x128xf32> to vector<1x128xf32>
    %c2_i32 = arith.constant 2 : i32
    %3 = arith.muli %arg0, %c2_i32 : i32
    %4 = tpu.iota {dimensions = array<i32: 0>} : vector<2x1xi32>
    %5 = vector.broadcast %3 : i32 to vector<2x1xi32>
    %6 = arith.addi %4, %5 : vector<2x1xi32>
    %7 = arith.sitofp %6 : vector<2x1xi32> to vector<2x1xf32>
    %cst = arith.constant 4.000000e+00 : f32
    %8 = vector.broadcast %cst : f32 to vector<2x1xf32>
    %9 = arith.mulf %7, %8 : vector<2x1xf32>
    %10 = vector.broadcast %9 : vector<2x1xf32> to vector<2x128xf32>
    %11 = vector.broadcast %2 : vector<1x128xf32> to vector<2x128xf32>
    %12 = arith.addf %10, %11 : vector<2x128xf32>
    %13 = vector.broadcast %1 : vector<1x128xf32> to vector<2x128xf32>
    %14 = arith.mulf %12, %13 : vector<2x128xf32>
    %15 = tpu.iota {dimensions = array<i32: 1>} : vector<1x128xi32>
    %c1_i32 = arith.constant 1 : i32
    %16 = vector.broadcast %c1_i32 : i32 to vector<1x128xi32>
    %17 = arith.andi %15, %16 : vector<1x128xi32>
    %c1_i32_1 = arith.constant 1 : i32
    %18 = vector.broadcast %c1_i32_1 : i32 to vector<1x128xi32>
    %19 = arith.cmpi eq, %17, %18 : vector<1x128xi32>
    %20 = math.cos %14 : vector<2x128xf32>
    %21 = math.sin %14 : vector<2x128xf32>
    %22 = vector.shape_cast %19 : vector<1x128xi1> to vector<1x128xi1>
    %23 = vector.broadcast %22 : vector<1x128xi1> to vector<2x128xi1>
    %24 = arith.select %23, %20, %21 : vector<2x128xi1>, vector<2x128xf32>
    %c0_2 = arith.constant 0 : index
    %c0_3 = arith.constant 0 : index
    %25 = vector.load %arg2[%c0_2, %c0_3] : memref<2x128xf32, #tpu.memory_space<vmem>>, vector<2x128xf32>
    tpu.vector_store %arg2[%c0_2, %c0_3], %24 {strides = array<i32>} : memref<2x128xf32, #tpu.memory_space<vmem>>, vector<2x128xf32>,
    return
  }
  func.func @transform_0(%arg0: i32) -> (i32, i32) {
    %c0_i32 = arith.constant 0 : i32
    %c0_i32_0 = arith.constant 0 : i32
    %c0_i32_1 = arith.constant 0 : i32
    return %c0_i32, %c0_i32_0 : i32, i32
  }
  func.func @transform_1(%arg0: i32) -> (i32, i32) {
    %c0_i32 = arith.constant 0 : i32
    %c0_i32_0 = arith.constant 0 : i32
    return %arg0, %c0_i32 : i32, i32
  }
}

</mosaic_0001>

<bundles_post_ra>
// kernel: tpu_custom_call.1
= control target key start
LH: loop header
LB: loop body
LE: loop exit
PB: predicated region body
PF: predicated region fallthrough
CT: control target
= control target key end

     0   :  { %6 = vsyncpa [#allocation3], 0  ;;  %s384_s0 = inlined_call_operand.hbm [shape: f32[2,128], index: 0, kind: input, shape index: {}]   ;;  %s385_s1 = inlined_call_operand.hbm [shape: f32[2,128], index: 1, kind: output, shape index: {}]  }
   0x1   :  { %7 = vsyncpa [#allocation4], 0  ;;  %s337_s6 = smov [#allocation2]  }
   0x2   :  { %s14_s7 = sshll.u32 %s337_s6, 4  ;;  %s15_s7 = int_to_ptr.vmem [resolvable:$true] %s14_s7 }
   0x3   :  { %s301_s8 = scalar_lea.vmem %s15_s7, 32  ;;  %p306_p1 = scmp.lt.s32.totalorder %s15_s7, %s15_s7 }
   0x4   :  { %p302_p0 = scmp.ne.s32.totalorder %s15_s7, %s301_s8  ;;  %p307_p2 = scmp.lt.s32.totalorder %s301_s8, %s301_s8 }
   0x6   :  { %p308_p3 = por %p307_p2, %p306_p1 }
   0x8   :  { %p309_p4 = pnand %p308_p3, %p302_p0 }
   0xa   :  { %312 = shalt.err (!%p309_p4)
}
   0xb   :  { %17 = dma.hbm_to_vmem [thread:$0]  %s384_s0, 32, %s15_s7, [#allocation3]  }
   0xc   :  { %333 = dma.done.wait [#allocation3], 32  }
   0xd   :  { %334 = vsyncadd [#allocation3], 4294967264  ;;  %v23_v0 = vlaneseq  ;;  %v21_v6 = vld [vmem:[#allocation2] sm:$0x3]  ;;  %v338_v22 = vmov 683565275  }
   0xe   :  { %v339_v24 = vmov 2475754826   ;;  %v340_v26 = vmov 2131351028   ;;  %v341_v28 = vmov 2102212464  }
   0xf   :  { %v24_v1 = vshrl.u32 %v23_v0, 7  ;;  %v342_v30 = vmov 920167782   ;;  %v343_v37 = vmov 1326507024   ;;  %s344_s0 = smov [#allocation5]  }
  0x10   :  { %s260_s11 = sshll.u32 %s344_s0, 4  ;;  %s261_s11 = int_to_ptr.vmem [resolvable:$true] %s260_s11 }
  0x11   :  { %v27_v2 = vcvt.s32.f32 %v24_v1  ;;  %v31_v3 = vsub.s32 1, %v24_v1  ;;  %v36_v4 = vsub.s32 0, %v24_v1  ;;  %s313_s12 = scalar_lea.vmem %s261_s11, 32  ;;  %p318_p6 = scmp.lt.s32.totalorder %s261_s11, %s261_s11 }
  0x12   :  { %p314_p5 = scmp.ne.s32.totalorder %s261_s11, %s313_s12  ;;  %p319_p7 = scmp.lt.s32.totalorder %s313_s12, %s313_s12 }
  0x13   :  { %v28_v5 = vmul.f32 4.0, %v27_v2  ;;  %v32_v7 = vrot.slane %v21_v6, %v31_v3  ;;  %v37_v8 = vrot.slane %v21_v6, %v36_v4 }
  0x14   :  { %p320_p8 = por %p319_p7, %p318_p6 }
  0x15   :  { %v33_v9 = vadd.f32 %v32_v7, %v28_v5 }
  0x16   :  { %p321_p9 = pnand %p320_p8, %p314_p5 }
  0x17   :  { %v359_v10 = vmul.f32 %v37_v8, %v33_v9 }
  0x19   :  { %v46_v11 = vand.u32 2139095040, %v359_v10  ;;  %v43_v13 = vand.u32 2147483647, %v359_v10  ;;  %vm45_vm7 = vcmp.lt.s32.totalorder %v359_v10, 0  ;;  %vm135_vm15 = vweird.f32 %v359_v10 }
  0x1b   :  { %v47_v12 = vshrl.u32 %v46_v11, 23  ;;  %v50_v16 = vand.u32 8388607, %v43_v13  ;;  %vm44_vm8 = vcmp.le.f32.partialorder %v43_v13, 0.7853982 }
  0x1d   :  { %v269_v14 = vadd.s32 4294967169, %v47_v12  ;;  %v51_v19 = vor.u32 8388608, %v50_v16 }
  0x1f   :  { %v53_v15 = vadd.s32 1, %v269_v14  ;;  %v91_v39 = vshll.u32 %v51_v19, 8 }
  0x21   :  { %vm54_vm0 = vcmp.gt.s32.totalorder %v53_v15, 0 }
  0x22   :  { %v55_v17 = vsel %vm54_vm0, %v53_v15, 0 }
  0x23   :  { %v57_v18 = vand.u32 31, %v55_v17  ;;  %v56_v20 = vshrl.u32 %v55_v17, 5 }
  0x25   :  { %v58_v21 = vsub.s32 32, %v57_v18  ;;  %v60_v23 = vshll.u32 %v338_v22, %v57_v18  ;;  %v63_v25 = vshll.u32 %v339_v24, %v57_v18  ;;  %v66_v27 = vshll.u32 %v340_v26, %v57_v18 }
  0x26   :  { %v69_v29 = vshll.u32 %v341_v28, %v57_v18  ;;  %v72_v31 = vshll.u32 %v342_v30, %v57_v18  ;;  %vm75_vm1 = vcmp.lt.s32.totalorder %v56_v20, 1  ;;  %vm78_vm2 = vcmp.lt.s32.totalorder %v56_v20, 4 }
  0x27   :  { %v59_v32 = vshrl.u32 %v338_v22, %v58_v21  ;;  %v61_v33 = vshrl.u32 %v339_v24, %v58_v21  ;;  %v64_v34 = vshrl.u32 %v340_v26, %v58_v21  ;;  %v67_v35 = vshrl.u32 %v341_v28, %v58_v21 }
  0x28   :  { %v70_v36 = vshrl.u32 %v342_v30, %v58_v21  ;;  %v73_v38 = vshrl.u32 %v343_v37, %v58_v21  ;;  %vm76_vm3 = vcmp.lt.s32.totalorder %v56_v20, 2  ;;  %vm77_vm4 = vcmp.lt.s32.totalorder %v56_v20, 3 }
  0x29   :  { %v62_v40 = vor.u32 %v61_v33, %v60_v23  ;;  %v65_v41 = vor.u32 %v64_v34, %v63_v25  ;;  %v68_v42 = vor.u32 %v67_v35, %v66_v27 }
  0x2a   :  { %v71_v43 = vor.u32 %v70_v36, %v69_v29  ;;  %v74_v44 = vor.u32 %v73_v38, %v72_v31 }
  0x2b   :  { %v79_v45 = vsel %vm75_vm1, %v59_v32, %v62_v40  ;;  %v80_v46 = vsel %vm78_vm2, %v68_v42, 2102212464  ;;  %v83_v47 = vsel %vm75_vm1, %v62_v40, %v65_v41  ;;  %v87_v48 = vsel %vm75_vm1, %v65_v41, %v68_v42 }
  0x2c   :  { %v81_v49 = vsel %vm77_vm4, %v65_v41, %v80_v46  ;;  %v84_v50 = vsel %vm78_vm2, %v71_v43, 920167782  ;;  %v88_v51 = vsel %vm78_vm2, %v74_v44, 1326507024  ;;  %v40_v32 = vand.u32 127, %v23_v0 }
  0x2d   :  { %v85_v52 = vsel %vm77_vm4, %v68_v42, %v84_v50  ;;  %v89_v53 = vsel %vm77_vm4, %v71_v43, %v88_v51  ;;  %v82_v54 = vsel %vm76_vm3, %v79_v45, %v81_v49 }
  0x2e   :  { %v86_v55 = vsel %vm76_vm3, %v83_v47, %v85_v52  ;;  %v90_v56 = vsel %vm76_vm3, %v87_v48, %v89_v53  ;;  %v98_v61 = vmul.u32 %v91_v39, %v82_v54  ;;  %v41_v36 = vand.u32 1, %v40_v32 }
  0x2f   :  { %v365_v57 = vmul.u32.u64.low %v91_v39, %v90_v56  ;;  %v366_v58 = vmul.u32.u64.high %v91_v39, %v90_v56, %v365_v57  ;;  %v368_v59 = vmul.u32.u64.low %v91_v39, %v86_v55  ;;  %v369_v60 = vmul.u32.u64.high %v91_v39, %v86_v55, %v368_v59 }
  0x30   :  { %vm42_vm0 = vcmp.eq.s32.totalorder %v41_v36, 1 }
  0x31   :  { %vm100_vm5 = vc.u32 %v366_v58, %v368_v59  ;;  %v101_v62 = vadd.s32 1, %v369_v60  ;;  %v99_v11 = vadd.s32 %v368_v59, %v366_v58 }
  0x33   :  { %v102_v63 = vsel %vm100_vm5, %v101_v62, %v369_v60 }
  0x34   :  { %v103_v1 = vadd.s32 %v102_v63, %v98_v61 }
  0x36   :  { %v104_v2 = vadd.s32 536870912, %v103_v1 }
  0x38   :  { %v105_v3 = vshrl.u32 %v104_v2, 30 }
  0x3a   :  { %v106_v4 = vshll.u32 %v105_v3, 30  ;;  %v129_v25 = vsub.s32 4, %v105_v3 }
  0x3c   :  { %v107_v5 = vsub.s32 %v103_v1, %v106_v4  ;;  %v130_v28 = vsel %vm45_vm7, %v129_v25, %v105_v3 }
  0x3d   :  { %v132_v30 = vsel %vm44_vm8, 0, %v130_v28 }
  0x3e   :  { %v109_v6 = vsub.s32 0, %v107_v5  ;;  %v239_v31 = vadd.s32 3, %v132_v30  ;;  %v136_v33 = vand.u32 3, %v132_v30 }
  0x40   :  { %v270_v7 = vmin.u32 %v109_v6, %v107_v5  ;;  %v240_v34 = vand.u32 3, %v239_v31  ;;  %vm141_vm9 = vcmp.eq.s32.totalorder %v136_v33, 2  ;;  %vm138_vm11 = vcmp.eq.s32.totalorder %v136_v33, 0 }
  0x41   :  { %vm137_vm13 = vcmp.lt.s32.totalorder %v136_v33, 2 }
  0x42   :  { %v111_v8 = vclz %v270_v7  ;;  %vm245_vm10 = vcmp.eq.s32.totalorder %v240_v34, 2  ;;  %vm242_vm12 = vcmp.eq.s32.totalorder %v240_v34, 0  ;;  %vm241_vm14 = vcmp.lt.s32.totalorder %v240_v34, 2 }
  0x44   :  { %v271_v9 = vadd.s32 4294967294, %v111_v8 }
  0x46   :  { %vm272_vm6 = vcmp.lt.s32.totalorder %v271_v9, 0 }
  0x47   :  { %v114_v12 = vsel %vm272_vm6, 0, %v271_v9 }
  0x48   :  { %v115_v14 = vsub.s32 32, %v114_v12  ;;  %v116_v15 = vshll.u32 %v107_v5, %v114_v12  ;;  %v119_v16 = vsub.s32 4294967266, %v114_v12 }
  0x4a   :  { %v117_v17 = vshrl.u32 %v99_v11, %v115_v14  ;;  %v120_v18 = vadd.s32 127, %v119_v16 }
  0x4c   :  { %v118_v19 = vor.u32 %v117_v17, %v116_v15  ;;  %v121_v20 = vshll.u32 %v120_v18, 23 }
  0x4e   :  { %v122_v21 = vor.u32 4788187, %v121_v20  ;;  %v125_v22 = vcvt.s32.f32 %v118_v19 }
  0x50   :  { %v123_v23 = vand.u32 2147483647, %v122_v21 }
  0x52   :  { %v126_v24 = vmul.f32 %v125_v22, %v123_v23 }
  0x54   :  { %v127_v26 = vxor.u32 2147483648, %v126_v24 }
  0x56   :  { %v128_v27 = vsel %vm45_vm7, %v127_v26, %v126_v24 }
  0x57   :  { %v131_v29 = vsel %vm44_vm8, %v359_v10, %v128_v27 }
  0x58   :  { %289 = vcosq.f32 %v131_v29 }
  0x59   :  { %291 = vsinq.f32 %v131_v29 }
  0x65   :  { %v290_v35 = vpop.eup %289 }
  0x66   :  { %v292_v37 = vpop.eup %291  ;;  %v142_v13 = vxor.u32 2147483648, %v290_v35 }
  0x67   :  { %v139_v38 = vxor.u32 2147483648, %v292_v37 }
  0x68   :  { %v143_v39 = vsel %vm141_vm9, %v142_v13, %v292_v37  ;;  %v247_v40 = vsel %vm245_vm10, %v142_v13, %v292_v37 }
  0x69   :  { %v140_v0 = vsel %vm138_vm11, %v290_v35, %v139_v38  ;;  %v244_v41 = vsel %vm242_vm12, %v290_v35, %v139_v38 }
  0x6a   :  { %v144_v42 = vsel %vm137_vm13, %v140_v0, %v143_v39  ;;  %v248_v43 = vsel %vm241_vm14, %v244_v41, %v247_v40 }
  0x6b   :  { %v145_v44 = vsel %vm135_vm15, nan, %v144_v42  ;;  %v249_v45 = vsel %vm135_vm15, nan, %v248_v43 }
  0x6c   :  { %v252_v46 = vsel %vm42_vm0, %v145_v44, %v249_v45 }
  0x6d   :  { %253 = vst [vmem:[#allocation5] sm:$0x3] %v252_v46 }
  0x6e   :  { %324 = shalt.err (!%p321_p9)
}
  0x6f   :  { %263 = dma.vmem_to_hbm [thread:$0]  %s261_s11, 32, %s385_s1, [#allocation4]  }
  0x70   :  { %335 = dma.done.wait [#allocation4], 32  }
  0x71   :  { %336 = vsyncadd [#allocation4], 4294967264 }
  0x72   :  { %267 = vsyncpa [#allocation3], 1 }
  0x73   :  { %268 = vsyncpa [#allocation4], 1 }

</bundles_post_ra>
